<compile_context>
chip_gen: v7x
topology: tpu7x:2x2x1
jax: 0.10.0
libtpu: 0.0.40
codegen_flags: <defaults>
</compile_context>

<pallas_src>
import functools

import numpy as np
import jax
import jax.numpy as jnp
from jax import lax
from jax.experimental import pallas as pl
from jax.experimental.pallas import tpu as pltpu


# ----------------------------- fused kernel -----------------------------

def _inception_bn_kernel(x_ref, w1x1_ref, wk_ref, b_ref, gb_ref, o_ref, *, seg_len):
    """All inception paths + concat + BatchNorm1d (batch statistics), one grid step.

    x_ref   : (C, B*L)   f32   activations, lane-dense
    w1x1_ref: (4F, C)    bf16  rows [w1; w2(1x1_3x3); w4(1x1_5x5); wp(pool_proj)]
    wk_ref  : (F, 8F)    bf16  [w3 stacked-tap (F,3F) | w5 stacked-tap (F,5F)]
    b_ref   : (6F, 1)    f32   [b1; b2; b4; bp; b3; b5]
    gb_ref  : (2*4F, 1)  f32   [gamma; beta]
    o_ref   : (4F, B*L)  f32
    """
    F_ = w1x1_ref.shape[0] // 4
    C4 = 4 * F_
    BL = x_ref.shape[1]
    L = seg_len

    x = x_ref[...]                              # (C, B*L) f32
    x_bf = x.astype(jnp.bfloat16)
    w1x1 = w1x1_ref[...]
    wk = wk_ref[...]
    b = b_ref[...]
    gb = gb_ref[...]

    # lane-position masks for segment-local shifts: computed once, reused by the
    # 3-tap conv, the 5-tap conv and the maxpool.
    pos = lax.broadcasted_iota(jnp.int32, (1, BL), 1) % L
    valid = {s: jnp.logical_and(pos + s >= 0, pos + s < L) for s in (-2, -1, 1, 2)}

    def shift_seg(t, s, fill):
        # out[..., l] = t[..., l + s] within each length-L segment, `fill` outside.
        rolled = pltpu.roll(t, shift=(-s) % BL, axis=1)
        return jnp.where(valid[s], rolled, fill)

    def relu(v):
        return jnp.maximum(v, 0.0)

    def mxu(a, bm):
        # bf16 operands, f32 accumulation on the MXU.
        return jnp.dot(a.astype(jnp.bfloat16), bm.astype(jnp.bfloat16),
                       preferred_element_type=jnp.float32)

    # ---- the three 1x1 convs on x fused into one dot: rows [w1; w2; w4] ----
    z = relu(mxu(w1x1[0:3 * F_, :], x_bf) + b[0:3 * F_, :])           # (3F, B*L)
    path1 = z[0:F_, :]
    t2 = z[F_:2 * F_, :]
    t3 = z[2 * F_:3 * F_, :]

    # ---- path 4: maxpool(k=3, s=1, p=1) -> 1x1 (pool_proj) ----
    neg_inf = float('-inf')
    pooled = jnp.maximum(jnp.maximum(shift_seg(x, -1, neg_inf), x),
                         shift_seg(x, 1, neg_inf))
    path4 = relu(mxu(w1x1[3 * F_:4 * F_, :], pooled) + b[3 * F_:4 * F_, :])

    # ---- path 2: 3-tap "same" conv as ONE (F, 3F) @ (3F, B*L) dot ----
    stk3 = jnp.concatenate([shift_seg(t2, -1, 0.0), t2, shift_seg(t2, 1, 0.0)], axis=0)
    path2 = relu(mxu(wk[:, 0:3 * F_], stk3) + b[4 * F_:5 * F_, :])

    # ---- path 3: 5-tap "same" conv as ONE (F, 5F) @ (5F, B*L) dot ----
    stk5 = jnp.concatenate([shift_seg(t3, -2, 0.0), shift_seg(t3, -1, 0.0), t3,
                            shift_seg(t3, 1, 0.0), shift_seg(t3, 2, 0.0)], axis=0)
    path3 = relu(mxu(wk[:, 3 * F_:8 * F_], stk5) + b[5 * F_:6 * F_, :])

    # ---- concat + fused BatchNorm1d (training-mode batch stats over B*L lanes) ----
    y = jnp.concatenate([path1, path2, path3, path4], axis=0)          # (4F, B*L) f32
    inv_n = 1.0 / BL
    mean = jnp.sum(y, axis=1, keepdims=True) * inv_n
    d = y - mean
    var = jnp.sum(d * d, axis=1, keepdims=True) * inv_n
    inv = lax.rsqrt(var + 1e-5)
    o_ref[...] = d * inv * gb[0:C4, :] + gb[C4:2 * C4, :]              # single full-tile store


# ----------------------------- wrapper -----------------------------

def inception_block(x, p):
    """x: (B, C_in, L) f32 -> (B, 4*filters, L) f32 (BatchNorm uses batch statistics)."""
    B, C, L = x.shape
    F_ = p['w1'].shape[0]
    C4 = 4 * F_
    BL = B * L
    assert L > 2, "segment length must exceed the 5-tap half-width"

    # lane-dense activation layout: (B, C, L) -> (C, B*L)
    x_flat = jnp.transpose(x, (1, 0, 2)).reshape(C, BL)

    bf = jnp.bfloat16
    # packed 1x1 weights: rows [w1; w2; w4; wp] -> (4F, C), bf16 for the MXU
    w1x1 = jnp.concatenate([p['w1'][..., 0], p['w2'][..., 0],
                            p['w4'][..., 0], p['wp'][..., 0]], axis=0).astype(bf)
    # K-tap weights in stacked-tap layout (F, K*F), packed into one (F, 8F) slab
    w3s = jnp.transpose(p['w3'], (0, 2, 1)).reshape(F_, 3 * F_)
    w5s = jnp.transpose(p['w5'], (0, 2, 1)).reshape(F_, 5 * F_)
    wk = jnp.concatenate([w3s, w5s], axis=1).astype(bf)
    # packed biases [b1; b2; b4; bp; b3; b5] and BN affine [gamma; beta] (stay f32)
    bias = jnp.concatenate([p['b1'], p['b2'], p['b4'],
                            p['bp'], p['b3'], p['b5']]).reshape(6 * F_, 1)
    gb = jnp.concatenate([p['gamma'], p['beta']]).reshape(2 * C4, 1)

    full = lambda shape: pl.BlockSpec(shape, lambda i: (0,) * len(shape))

    out_flat = pl.pallas_call(
        functools.partial(_inception_bn_kernel, seg_len=L),
        out_shape=jax.ShapeDtypeStruct((C4, BL), jnp.float32),
        grid=(1,),   # whole problem (all of B) in one step at these tiny shapes
        in_specs=[full((C, BL)), full((4 * F_, C)), full((F_, 8 * F_)),
                  full((6 * F_, 1)), full((2 * C4, 1))],
        out_specs=full((C4, BL)),
        compiler_params=pltpu.CompilerParams(dimension_semantics=("arbitrary",)),
    )(x_flat, w1x1, wk, bias, gb)

    # back to PyTorch's NCL layout
    return jnp.transpose(out_flat.reshape(C4, B, L), (1, 0, 2))


# ----------------------------- deterministic parameter init -----------------------------

def init_params(key, filters, in_ch):
    def conv_init(k, out_c, in_c, ksize):
        k1, k2 = jax.random.split(k)
        bound = 1.0 / np.sqrt(in_c * ksize)
        w = jax.random.uniform(k1, (out_c, in_c, ksize), jnp.float32, -bound, bound)
        b = jax.random.uniform(k2, (out_c,), jnp.float32, -bound, bound)
        return w, b

    ks = jax.random.split(key, 6)
    w1, b1 = conv_init(ks[0], filters, in_ch, 1)
    w2, b2 = conv_init(ks[1], filters, in_ch, 1)
    w3, b3 = conv_init(ks[2], filters, filters, 3)
    w4, b4 = conv_init(ks[3], filters, in_ch, 1)
    w5, b5 = conv_init(ks[4], filters, filters, 5)
    wp, bp = conv_init(ks[5], filters, in_ch, 1)
    return dict(w1=w1, b1=b1, w2=w2, b2=b2, w3=w3, b3=b3, w4=w4, b4=b4,
                w5=w5, b5=b5, wp=wp, bp=bp,
                gamma=jnp.ones((filters * 4,), jnp.float32),
                beta=jnp.zeros((filters * 4,), jnp.float32))


# ----------------------------- numpy reference (PyTorch semantics) -----------------------------
# The reference mirrors the kernel's bf16 MXU *operand* precision (standard TPU matmul
# precision: bf16 inputs, f32 accumulation); all accumulation, bias, relu, maxpool and
# BatchNorm math is f32, so conv / pool / concat / BN semantics are checked exactly.

def _round_bf16(a):
    return np.asarray(jnp.asarray(a, jnp.float32).astype(jnp.bfloat16).astype(jnp.float32))


def reference(x, p):
    x = np.asarray(x, np.float32)
    pn = {k: np.asarray(v, np.float32) for k, v in p.items()}
    q = _round_bf16

    def conv1d(xx, w, b, pad):
        B, C, L = xx.shape
        O, _, K = w.shape
        xp = np.zeros((B, C, L + 2 * pad), np.float32)
        xp[:, :, pad:pad + L] = xx
        out = np.zeros((B, O, L), np.float32)
        for k in range(K):
            out += np.einsum('oc,bcl->bol', w[:, :, k], xp[:, :, k:k + L])
        return out + b[None, :, None]

    def relu(v):
        return np.maximum(v, 0.0)

    def maxpool3(xx):
        B, C, L = xx.shape
        xp = np.full((B, C, L + 2), -np.inf, np.float32)
        xp[:, :, 1:1 + L] = xx
        return np.maximum(np.maximum(xp[:, :, 0:L], xp[:, :, 1:1 + L]), xp[:, :, 2:2 + L])

    xq = q(x)
    p1 = relu(conv1d(xq, q(pn['w1']), pn['b1'], 0))
    t2 = relu(conv1d(xq, q(pn['w2']), pn['b2'], 0))
    p2 = relu(conv1d(q(t2), q(pn['w3']), pn['b3'], 1))
    t3 = relu(conv1d(xq, q(pn['w4']), pn['b4'], 0))
    p3 = relu(conv1d(q(t3), q(pn['w5']), pn['b5'], 2))
    p4 = relu(conv1d(q(maxpool3(x)), q(pn['wp']), pn['bp'], 0))
    y = np.concatenate([p1, p2, p3, p4], axis=1)
    mean = y.mean(axis=(0, 2), keepdims=True)
    var = y.var(axis=(0, 2), keepdims=True)   # biased, as BatchNorm uses in training forward
    return (y - mean) / np.sqrt(var + 1e-5) * pn['gamma'][None, :, None] + pn['beta'][None, :, None]


# ----------------------------- main -----------------------------

if __name__ == "__main__":
    B, C_IN, L, FILTERS = 2, 21, 16, 8

    key = jax.random.PRNGKey(0)
    kx, kp = jax.random.split(key)
    x = jax.random.normal(kx, (B, C_IN, L), jnp.float32)
    params = init_params(kp, FILTERS, C_IN)

    out = inception_block(x, params)
    out = jax.block_until_ready(out)

    ref = reference(x, params)
    assert out.shape == (B, 4 * FILTERS, L)
    np.testing.assert_allclose(np.asarray(out), ref, rtol=1e-2, atol=1e-2)

    print("KERNEL_OK")
</pallas_src>

<mosaic_0001>
module attributes {stable_mosaic.version = 11 : i64} {
  func.func @_inception_bn_kernel(%arg0: i32, %arg1: memref<21x32xf32, #tpu.memory_space<vmem>>, %arg2: memref<32x21xbf16, #tpu.memory_space<vmem>>, %arg3: memref<8x64xbf16, #tpu.memory_space<vmem>>, %arg4: memref<48x1xf32, #tpu.memory_space<vmem>>, %arg5: memref<64x1xf32, #tpu.memory_space<vmem>>, %arg6: memref<32x32xf32, #tpu.memory_space<vmem>>) attributes {dimension_semantics = [#tpu.dimension_semantics<arbitrary>], iteration_bounds = array<i64: 1>, scalar_prefetch = 0 : i64, scratch_operands = 0 : i64, tpu.core_type = #tpu.core_type<tc>, window_params = [{pipeline_mode = #tpu.pipeline_mode<synchronous>, transform_indices = @transform_0, window_bounds = array<i64: 21, 32>}, {pipeline_mode = #tpu.pipeline_mode<synchronous>, transform_indices = @transform_1, window_bounds = array<i64: 32, 21>}, {pipeline_mode = #tpu.pipeline_mode<synchronous>, transform_indices = @transform_2, window_bounds = array<i64: 8, 64>}, {pipeline_mode = #tpu.pipeline_mode<synchronous>, transform_indices = @transform_3, window_bounds = array<i64: 48, 1>}, {pipeline_mode = #tpu.pipeline_mode<synchronous>, transform_indices = @transform_4, window_bounds = array<i64: 64, 1>}, {pipeline_mode = #tpu.pipeline_mode<synchronous>, transform_indices = @transform_5, window_bounds = array<i64: 32, 32>}]} {
    %c0 = arith.constant 0 : index
    %c0_0 = arith.constant 0 : index
    %0 = vector.load %arg1[%c0, %c0_0] : memref<21x32xf32, #tpu.memory_space<vmem>>, vector<21x32xf32>
    %1 = arith.truncf %0 : vector<21x32xf32> to vector<21x32xbf16>
    %c0_1 = arith.constant 0 : index
    %c0_2 = arith.constant 0 : index
    %2 = vector.load %arg2[%c0_1, %c0_2] : memref<32x21xbf16, #tpu.memory_space<vmem>>, vector<32x21xbf16>
    %c0_3 = arith.constant 0 : index
    %c0_4 = arith.constant 0 : index
    %3 = vector.load %arg3[%c0_3, %c0_4] : memref<8x64xbf16, #tpu.memory_space<vmem>>, vector<8x64xbf16>
    %c0_5 = arith.constant 0 : index
    %c0_6 = arith.constant 0 : index
    %4 = vector.load %arg4[%c0_5, %c0_6] : memref<48x1xf32, #tpu.memory_space<vmem>>, vector<48x1xf32>
    %c0_7 = arith.constant 0 : index
    %c0_8 = arith.constant 0 : index
    %5 = vector.load %arg5[%c0_7, %c0_8] : memref<64x1xf32, #tpu.memory_space<vmem>>, vector<64x1xf32>
    %6 = tpu.iota {dimensions = array<i32: 1>} : vector<1x32xi32>
    %c16_i32 = arith.constant 16 : i32
    %c0_i32 = arith.constant 0 : i32
    %7 = arith.cmpi eq, %c16_i32, %c0_i32 : i32
    %c1_i32 = arith.constant 1 : i32
    %8 = arith.select %7, %c1_i32, %c16_i32 : i32
    %9 = vector.broadcast %8 : i32 to vector<1x32xi32>
    %10 = arith.remsi %6, %9 : vector<1x32xi32>
    %c0_i32_9 = arith.constant 0 : i32
    %11 = vector.broadcast %c0_i32_9 : i32 to vector<1x32xi32>
    %12 = arith.cmpi ne, %10, %11 : vector<1x32xi32>
    %c0_i32_10 = arith.constant 0 : i32
    %13 = vector.broadcast %c0_i32_10 : i32 to vector<1x32xi32>
    %14 = arith.cmpi slt, %10, %13 : vector<1x32xi32>
    %c0_i32_11 = arith.constant 0 : i32
    %15 = arith.cmpi slt, %8, %c0_i32_11 : i32
    %16 = vector.broadcast %15 : i1 to vector<1x32xi1>
    %17 = vector.broadcast %16 : vector<1x32xi1> to vector<1x32xi1>
    %18 = arith.xori %14, %17 : vector<1x32xi1>
    %19 = arith.andi %18, %12 : vector<1x32xi1>
    %20 = vector.broadcast %8 : i32 to vector<1x32xi32>
    %21 = arith.addi %10, %20 : vector<1x32xi32>
    %22 = arith.select %19, %21, %10 : vector<1x32xi1>, vector<1x32xi32>
    %c-2_i32 = arith.constant -2 : i32
    %23 = vector.broadcast %c-2_i32 : i32 to vector<1x32xi32>
    %24 = arith.addi %22, %23 : vector<1x32xi32>
    %c0_i32_12 = arith.constant 0 : i32
    %25 = vector.broadcast %c0_i32_12 : i32 to vector<1x32xi32>
    %26 = arith.cmpi sge, %24, %25 : vector<1x32xi32>
    %c-2_i32_13 = arith.constant -2 : i32
    %27 = vector.broadcast %c-2_i32_13 : i32 to vector<1x32xi32>
    %28 = arith.addi %22, %27 : vector<1x32xi32>
    %c16_i32_14 = arith.constant 16 : i32
    %29 = vector.broadcast %c16_i32_14 : i32 to vector<1x32xi32>
    %30 = arith.cmpi slt, %28, %29 : vector<1x32xi32>
    %31 = arith.andi %26, %30 : vector<1x32xi1>
    %c-1_i32 = arith.constant -1 : i32
    %32 = vector.broadcast %c-1_i32 : i32 to vector<1x32xi32>
    %33 = arith.addi %22, %32 : vector<1x32xi32>
    %c0_i32_15 = arith.constant 0 : i32
    %34 = vector.broadcast %c0_i32_15 : i32 to vector<1x32xi32>
    %35 = arith.cmpi sge, %33, %34 : vector<1x32xi32>
    %c-1_i32_16 = arith.constant -1 : i32
    %36 = vector.broadcast %c-1_i32_16 : i32 to vector<1x32xi32>
    %37 = arith.addi %22, %36 : vector<1x32xi32>
    %c16_i32_17 = arith.constant 16 : i32
    %38 = vector.broadcast %c16_i32_17 : i32 to vector<1x32xi32>
    %39 = arith.cmpi slt, %37, %38 : vector<1x32xi32>
    %40 = arith.andi %35, %39 : vector<1x32xi1>
    %c1_i32_18 = arith.constant 1 : i32
    %41 = vector.broadcast %c1_i32_18 : i32 to vector<1x32xi32>
    %42 = arith.addi %22, %41 : vector<1x32xi32>
    %c0_i32_19 = arith.constant 0 : i32
    %43 = vector.broadcast %c0_i32_19 : i32 to vector<1x32xi32>
    %44 = arith.cmpi sge, %42, %43 : vector<1x32xi32>
    %c1_i32_20 = arith.constant 1 : i32
    %45 = vector.broadcast %c1_i32_20 : i32 to vector<1x32xi32>
    %46 = arith.addi %22, %45 : vector<1x32xi32>
    %c16_i32_21 = arith.constant 16 : i32
    %47 = vector.broadcast %c16_i32_21 : i32 to vector<1x32xi32>
    %48 = arith.cmpi slt, %46, %47 : vector<1x32xi32>
    %49 = arith.andi %44, %48 : vector<1x32xi1>
    %c2_i32 = arith.constant 2 : i32
    %50 = vector.broadcast %c2_i32 : i32 to vector<1x32xi32>
    %51 = arith.addi %22, %50 : vector<1x32xi32>
    %c0_i32_22 = arith.constant 0 : i32
    %52 = vector.broadcast %c0_i32_22 : i32 to vector<1x32xi32>
    %53 = arith.cmpi sge, %51, %52 : vector<1x32xi32>
    %c2_i32_23 = arith.constant 2 : i32
    %54 = vector.broadcast %c2_i32_23 : i32 to vector<1x32xi32>
    %55 = arith.addi %22, %54 : vector<1x32xi32>
    %c16_i32_24 = arith.constant 16 : i32
    %56 = vector.broadcast %c16_i32_24 : i32 to vector<1x32xi32>
    %57 = arith.cmpi slt, %55, %56 : vector<1x32xi32>
    %58 = arith.andi %53, %57 : vector<1x32xi1>
    %59 = vector.extract_strided_slice %2 {offsets = [0, 0], sizes = [24, 21], strides = [1, 1]} : vector<32x21xbf16> to vector<24x21xbf16>
    %cst = arith.constant dense<0.000000e+00> : vector<24x32xf32>
    %60 = tpu.matmul %59, %1, %cst {dimension_numbers = #tpu.dot_dimension_numbers<[1], [0], [0], [1], [0, 0, 1, 1], [], []>} : vector<24x21xbf16>, vector<21x32xbf16>, vector<24x32xf32> -> vector<24x32xf32>
    %61 = vector.extract_strided_slice %4 {offsets = [0, 0], sizes = [24, 1], strides = [1, 1]} : vector<48x1xf32> to vector<24x1xf32>
    %62 = vector.broadcast %61 : vector<24x1xf32> to vector<24x32xf32>
    %63 = arith.addf %60, %62 : vector<24x32xf32>
    %cst_25 = arith.constant 0.000000e+00 : f32
    %64 = vector.broadcast %cst_25 : f32 to vector<24x32xf32>
    %65 = arith.maximumf %63, %64 : vector<24x32xf32>
    %66 = vector.extract_strided_slice %65 {offsets = [0, 0], sizes = [8, 32], strides = [1, 1]} : vector<24x32xf32> to vector<8x32xf32>
    %67 = vector.extract_strided_slice %65 {offsets = [8, 0], sizes = [8, 32], strides = [1, 1]} : vector<24x32xf32> to vector<8x32xf32>
    %68 = vector.extract_strided_slice %65 {offsets = [16, 0], sizes = [8, 32], strides = [1, 1]} : vector<24x32xf32> to vector<8x32xf32>
    %c1_i32_26 = arith.constant 1 : i32
    %69 = tpu.dynamic_rotate %0 by %c1_i32_26 dim 1 : vector<21x32xf32>, i32 -> vector<21x32xf32>
    %cst_27 = arith.constant 0xFF800000 : f32
    %70 = vector.shape_cast %40 : vector<1x32xi1> to vector<1x32xi1>
    %71 = vector.broadcast %70 : vector<1x32xi1> to vector<21x32xi1>
    %72 = vector.broadcast %cst_27 : f32 to vector<21x32xf32>
    %73 = arith.select %71, %69, %72 : vector<21x32xi1>, vector<21x32xf32>
    %74 = arith.maximumf %73, %0 : vector<21x32xf32>
    %c31_i32 = arith.constant 31 : i32
    %75 = tpu.dynamic_rotate %0 by %c31_i32 dim 1 : vector<21x32xf32>, i32 -> vector<21x32xf32>
    %cst_28 = arith.constant 0xFF800000 : f32
    %76 = vector.shape_cast %49 : vector<1x32xi1> to vector<1x32xi1>
    %77 = vector.broadcast %76 : vector<1x32xi1> to vector<21x32xi1>
    %78 = vector.broadcast %cst_28 : f32 to vector<21x32xf32>
    %79 = arith.select %77, %75, %78 : vector<21x32xi1>, vector<21x32xf32>
    %80 = arith.maximumf %74, %79 : vector<21x32xf32>
    %81 = vector.extract_strided_slice %2 {offsets = [24, 0], sizes = [8, 21], strides = [1, 1]} : vector<32x21xbf16> to vector<8x21xbf16>
    %82 = arith.truncf %80 : vector<21x32xf32> to vector<21x32xbf16>
    %cst_29 = arith.constant dense<0.000000e+00> : vector<8x32xf32>
    %83 = tpu.matmul %81, %82, %cst_29 {dimension_numbers = #tpu.dot_dimension_numbers<[1], [0], [0], [1], [0, 0, 1, 1], [], []>} : vector<8x21xbf16>, vector<21x32xbf16>, vector<8x32xf32> -> vector<8x32xf32>
    %84 = vector.extract_strided_slice %4 {offsets = [24, 0], sizes = [8, 1], strides = [1, 1]} : vector<48x1xf32> to vector<8x1xf32>
    %85 = vector.broadcast %84 : vector<8x1xf32> to vector<8x32xf32>
    %86 = arith.addf %83, %85 : vector<8x32xf32>
    %cst_30 = arith.constant 0.000000e+00 : f32
    %87 = vector.broadcast %cst_30 : f32 to vector<8x32xf32>
    %88 = arith.maximumf %86, %87 : vector<8x32xf32>
    %c1_i32_31 = arith.constant 1 : i32
    %89 = tpu.dynamic_rotate %67 by %c1_i32_31 dim 1 : vector<8x32xf32>, i32 -> vector<8x32xf32>
    %cst_32 = arith.constant 0.000000e+00 : f32
    %90 = vector.shape_cast %40 : vector<1x32xi1> to vector<1x32xi1>
    %91 = vector.broadcast %90 : vector<1x32xi1> to vector<8x32xi1>
    %92 = vector.broadcast %cst_32 : f32 to vector<8x32xf32>
    %93 = arith.select %91, %89, %92 : vector<8x32xi1>, vector<8x32xf32>
    %c31_i32_33 = arith.constant 31 : i32
    %94 = tpu.dynamic_rotate %67 by %c31_i32_33 dim 1 : vector<8x32xf32>, i32 -> vector<8x32xf32>
    %cst_34 = arith.constant 0.000000e+00 : f32
    %95 = vector.shape_cast %49 : vector<1x32xi1> to vector<1x32xi1>
    %96 = vector.broadcast %95 : vector<1x32xi1> to vector<8x32xi1>
    %97 = vector.broadcast %cst_34 : f32 to vector<8x32xf32>
    %98 = arith.select %96, %94, %97 : vector<8x32xi1>, vector<8x32xf32>
    %99 = tpu.concatenate %93, %67, %98 in 0 : vector<8x32xf32>, vector<8x32xf32>, vector<8x32xf32> -> vector<24x32xf32>
    %100 = vector.extract_strided_slice %3 {offsets = [0, 0], sizes = [8, 24], strides = [1, 1]} : vector<8x64xbf16> to vector<8x24xbf16>
    %101 = arith.truncf %99 : vector<24x32xf32> to vector<24x32xbf16>
    %cst_35 = arith.constant dense<0.000000e+00> : vector<8x32xf32>
    %102 = tpu.matmul %100, %101, %cst_35 {dimension_numbers = #tpu.dot_dimension_numbers<[1], [0], [0], [1], [0, 0, 1, 1], [], []>} : vector<8x24xbf16>, vector<24x32xbf16>, vector<8x32xf32> -> vector<8x32xf32>
    %103 = vector.extract_strided_slice %4 {offsets = [32, 0], sizes = [8, 1], strides = [1, 1]} : vector<48x1xf32> to vector<8x1xf32>
    %104 = vector.broadcast %103 : vector<8x1xf32> to vector<8x32xf32>
    %105 = arith.addf %102, %104 : vector<8x32xf32>
    %cst_36 = arith.constant 0.000000e+00 : f32
    %106 = vector.broadcast %cst_36 : f32 to vector<8x32xf32>
    %107 = arith.maximumf %105, %106 : vector<8x32xf32>
    %c2_i32_37 = arith.constant 2 : i32
    %108 = tpu.dynamic_rotate %68 by %c2_i32_37 dim 1 : vector<8x32xf32>, i32 -> vector<8x32xf32>
    %cst_38 = arith.constant 0.000000e+00 : f32
    %109 = vector.shape_cast %31 : vector<1x32xi1> to vector<1x32xi1>
    %110 = vector.broadcast %109 : vector<1x32xi1> to vector<8x32xi1>
    %111 = vector.broadcast %cst_38 : f32 to vector<8x32xf32>
    %112 = arith.select %110, %108, %111 : vector<8x32xi1>, vector<8x32xf32>
    %c1_i32_39 = arith.constant 1 : i32
    %113 = tpu.dynamic_rotate %68 by %c1_i32_39 dim 1 : vector<8x32xf32>, i32 -> vector<8x32xf32>
    %cst_40 = arith.constant 0.000000e+00 : f32
    %114 = vector.shape_cast %40 : vector<1x32xi1> to vector<1x32xi1>
    %115 = vector.broadcast %114 : vector<1x32xi1> to vector<8x32xi1>
    %116 = vector.broadcast %cst_40 : f32 to vector<8x32xf32>
    %117 = arith.select %115, %113, %116 : vector<8x32xi1>, vector<8x32xf32>
    %c31_i32_41 = arith.constant 31 : i32
    %118 = tpu.dynamic_rotate %68 by %c31_i32_41 dim 1 : vector<8x32xf32>, i32 -> vector<8x32xf32>
    %cst_42 = arith.constant 0.000000e+00 : f32
    %119 = vector.shape_cast %49 : vector<1x32xi1> to vector<1x32xi1>
    %120 = vector.broadcast %119 : vector<1x32xi1> to vector<8x32xi1>
    %121 = vector.broadcast %cst_42 : f32 to vector<8x32xf32>
    %122 = arith.select %120, %118, %121 : vector<8x32xi1>, vector<8x32xf32>
    %c30_i32 = arith.constant 30 : i32
    %123 = tpu.dynamic_rotate %68 by %c30_i32 dim 1 : vector<8x32xf32>, i32 -> vector<8x32xf32>
    %cst_43 = arith.constant 0.000000e+00 : f32
    %124 = vector.shape_cast %58 : vector<1x32xi1> to vector<1x32xi1>
    %125 = vector.broadcast %124 : vector<1x32xi1> to vector<8x32xi1>
    %126 = vector.broadcast %cst_43 : f32 to vector<8x32xf32>
    %127 = arith.select %125, %123, %126 : vector<8x32xi1>, vector<8x32xf32>
    %128 = tpu.concatenate %112, %117, %68, %122, %127 in 0 : vector<8x32xf32>, vector<8x32xf32>, vector<8x32xf32>, vector<8x32xf32>, vector<8x32xf32> -> vector<40x32xf32>
    %129 = vector.extract_strided_slice %3 {offsets = [0, 24], sizes = [8, 40], strides = [1, 1]} : vector<8x64xbf16> to vector<8x40xbf16>
    %130 = arith.truncf %128 : vector<40x32xf32> to vector<40x32xbf16>
    %cst_44 = arith.constant dense<0.000000e+00> : vector<8x32xf32>
    %131 = tpu.matmul %129, %130, %cst_44 {dimension_numbers = #tpu.dot_dimension_numbers<[1], [0], [0], [1], [0, 0, 1, 1], [], []>} : vector<8x40xbf16>, vector<40x32xbf16>, vector<8x32xf32> -> vector<8x32xf32>
    %132 = vector.extract_strided_slice %4 {offsets = [40, 0], sizes = [8, 1], strides = [1, 1]} : vector<48x1xf32> to vector<8x1xf32>
    %133 = vector.broadcast %132 : vector<8x1xf32> to vector<8x32xf32>
    %134 = arith.addf %131, %133 : vector<8x32xf32>
    %cst_45 = arith.constant 0.000000e+00 : f32
    %135 = vector.broadcast %cst_45 : f32 to vector<8x32xf32>
    %136 = arith.maximumf %134, %135 : vector<8x32xf32>
    %137 = tpu.concatenate %66, %107, %136, %88 in 0 : vector<8x32xf32>, vector<8x32xf32>, vector<8x32xf32>, vector<8x32xf32> -> vector<32x32xf32>
    %cst_46 = arith.constant dense<0.000000e+00> : vector<32xf32>
    %138 = vector.multi_reduction <add>, %137, %cst_46 [1] : vector<32x32xf32> to vector<32xf32>
    %139 = vector.shape_cast %138 : vector<32xf32> to vector<32x1xf32>
    %cst_47 = arith.constant 3.125000e-02 : f32
    %140 = vector.broadcast %cst_47 : f32 to vector<32x1xf32>
    %141 = arith.mulf %139, %140 : vector<32x1xf32>
    %142 = vector.broadcast %141 : vector<32x1xf32> to vector<32x32xf32>
    %143 = arith.subf %137, %142 : vector<32x32xf32>
    %144 = arith.mulf %143, %143 : vector<32x32xf32>
    %cst_48 = arith.constant dense<0.000000e+00> : vector<32xf32>
    %145 = vector.multi_reduction <add>, %144, %cst_48 [1] : vector<32x32xf32> to vector<32xf32>
    %146 = vector.shape_cast %145 : vector<32xf32> to vector<32x1xf32>
    %cst_49 = arith.constant 3.125000e-02 : f32
    %147 = vector.broadcast %cst_49 : f32 to vector<32x1xf32>
    %148 = arith.mulf %146, %147 : vector<32x1xf32>
    %cst_50 = arith.constant 9.99999974E-6 : f32
    %149 = vector.broadcast %cst_50 : f32 to vector<32x1xf32>
    %150 = arith.addf %148, %149 : vector<32x1xf32>
    %151 = math.rsqrt %150 : vector<32x1xf32>
    %152 = vector.broadcast %151 : vector<32x1xf32> to vector<32x32xf32>
    %153 = arith.mulf %143, %152 : vector<32x32xf32>
    %154 = vector.extract_strided_slice %5 {offsets = [0, 0], sizes = [32, 1], strides = [1, 1]} : vector<64x1xf32> to vector<32x1xf32>
    %155 = vector.broadcast %154 : vector<32x1xf32> to vector<32x32xf32>
    %156 = arith.mulf %153, %155 : vector<32x32xf32>
    %157 = vector.extract_strided_slice %5 {offsets = [32, 0], sizes = [32, 1], strides = [1, 1]} : vector<64x1xf32> to vector<32x1xf32>
    %158 = vector.broadcast %157 : vector<32x1xf32> to vector<32x32xf32>
    %159 = arith.addf %156, %158 : vector<32x32xf32>
    %c0_51 = arith.constant 0 : index
    %c0_52 = arith.constant 0 : index
    %160 = vector.load %arg6[%c0_51, %c0_52] : memref<32x32xf32, #tpu.memory_space<vmem>>, vector<32x32xf32>
    tpu.vector_store %arg6[%c0_51, %c0_52], %159 {strides = array<i32>} : memref<32x32xf32, #tpu.memory_space<vmem>>, vector<32x32xf32>,
    return
  }
  func.func @transform_0(%arg0: i32) -> (i32, i32) {
    %c0_i32 = arith.constant 0 : i32
    %c0_i32_0 = arith.constant 0 : i32
    %c0_i32_1 = arith.constant 0 : i32
    return %c0_i32, %c0_i32_0 : i32, i32
  }
  func.func @transform_1(%arg0: i32) -> (i32, i32) {
    %c0_i32 = arith.constant 0 : i32
    %c0_i32_0 = arith.constant 0 : i32
    %c0_i32_1 = arith.constant 0 : i32
    return %c0_i32, %c0_i32_0 : i32, i32
  }
  func.func @transform_2(%arg0: i32) -> (i32, i32) {
    %c0_i32 = arith.constant 0 : i32
    %c0_i32_0 = arith.constant 0 : i32
    %c0_i32_1 = arith.constant 0 : i32
    return %c0_i32, %c0_i32_0 : i32, i32
  }
  func.func @transform_3(%arg0: i32) -> (i32, i32) {
    %c0_i32 = arith.constant 0 : i32
    %c0_i32_0 = arith.constant 0 : i32
    %c0_i32_1 = arith.constant 0 : i32
    return %c0_i32, %c0_i32_0 : i32, i32
  }
  func.func @transform_4(%arg0: i32) -> (i32, i32) {
    %c0_i32 = arith.constant 0 : i32
    %c0_i32_0 = arith.constant 0 : i32
    %c0_i32_1 = arith.constant 0 : i32
    return %c0_i32, %c0_i32_0 : i32, i32
  }
  func.func @transform_5(%arg0: i32) -> (i32, i32) {
    %c0_i32 = arith.constant 0 : i32
    %c0_i32_0 = arith.constant 0 : i32
    %c0_i32_1 = arith.constant 0 : i32
    return %c0_i32, %c0_i32_0 : i32, i32
  }
}

</mosaic_0001>

<bundles_post_ra>
// kernel: tpu_custom_call.1
= control target key start
LH: loop header
LB: loop body
LE: loop exit
PB: predicated region body
PF: predicated region fallthrough
CT: control target
= control target key end

     0   :  { %vm106_vm0 = vcmask 1041408   ;;  %vm107_vm1 = vcmask 1042432   ;;  %v700_v7 = vmov 65535   ;;  %vm99_vm2 = vcmask 171008   ;;  %s939_s0 = inlined_call_operand.vmem [shape: f32[21,32], index: 0, kind: input, shape index: {}]   ;;  %s940_s1 = inlined_call_operand.vmem [shape: bf16[32,21], index: 1, kind: input, shape index: {}]   ;;  %s941_s2 = inlined_call_operand.vmem [shape: bf16[8,64], index: 2, kind: input, shape index: {}]   ;;  %s942_s3 = inlined_call_operand.vmem [shape: f32[48,1], index: 3, kind: input, shape index: {}]   ;;  %s943_s4 = inlined_call_operand.vmem [shape: f32[64,1], index: 4, kind: input, shape index: {}]   ;;  %s944_s5 = inlined_call_operand.hbm [shape: f32[32,32], index: 5, kind: output, shape index: {}]  }
   0x1   :  { %v747_v0 = vld [vmem:[%s939_s0] sm:$0xff]  ;;  %v752_v1 = vld [vmem:[%s939_s0 + $0x8] sm:$0xff]  ;;  %v757_v2 = vld [vmem:[%s939_s0 + $0x10] sm:$0x1f]  ;;  %v108_v8 = vsel %vm106_vm0, 4294967295, %v700_v7  ;;  %v701_v12 = vmov 0  }
   0x2   :  { %v25_v3 = vpack.c.bf16 %v752_v1, %v747_v0  ;;  %v26_v4 = vpack.c.bf16 %v757_v2, %v757_v2  ;;  %v665_v5 = vld [vmem:[%s940_s1] sm:$0xff]   ;;  %v634_v6 = vpack.i.bf16 %v752_v1, %v747_v0  ;;  %v768_v9 = vsel %vm107_vm1, %v108_v8, 0  ;;  %v34_v10 = vld [vmem:[%s942_s3 + $0x10] sm:$0xff]  ;;  %633 = vset.pattern.permute.xlu0 %v701_v12 }
   0x3   :  { %589 = vmatprep.mubr.msk.bf16.mxu0 %vm99_vm2, %v665_v5 }
   0x4   :  { %585 = vmatprep.subr.bf16.mxu0 %v25_v3  ;;  %v111_v11 = vand.u32 %v768_v9, %v26_v4 }
   0x5   :  { %586 = vmatpush3.bf16.msra.mxu0 %v25_v3 }
   0x6   :  { %10 = vsyncpa [#allocation3], 0  ;;  %88 = vperm.xlu0 %633, %v34_v10   ;;  %s702_s27 = smov 32   ;;  %587 = vmatprep.subr.bf16.mxu0 %v111_v11  ;;  %v33_v13 = vld [vmem:[%s942_s3 + $0x8] sm:$0xff]  ;;  %vm164_vm3 = vcmask 1047808   ;;  %v703_v38 = vmov 0.0   ;;  %v46_v46 = vlaneseq }
   0x7   :  { %635 = vrot.lane.b32.xlu1 %v634_v6, %s702_s27  ;;  %v666_v14 = vld [vmem:[%s940_s1 + $0x8] ss:$0 sps:$4 sm:$0xff]   ;;  %593 = vmatprep.subr.bf16.mxu1 %v703_v38  ;;  %s704_s7 = smov 97   ;;  %s705_s8 = smov 127   ;;  %vm706_vm4 = vmmov 0   ;;  %v32_v10 = vld [vmem:[%s942_s3] sm:$0xff] }
   0x8   :  { %664 = vset.pattern.permute.xlu1 %v701_v12  ;;  %597 = vmatprep.mubr.msk.bf16.mxu1 %vm706_vm4, %v703_v38  ;;  %v47_v47 = vand.u32 127, %v46_v46  ;;  %s707_s9 = smov 98   ;;  %v830_v54 = vld [vmem:[%s941_s2] sm:$0xf]  ;;  %s708_s2 = smov 104   ;;  %vm710_vm8 = vmmov 1  }
   0x9   :  { %588 = vmatpush3.bf16.msra.mxu0 %v111_v11  ;;  %v563_v56 = vcombine.low %v830_v54, %v830_v54  ;;  %s709_s12 = smov 126   ;;  %vm300_vm12 = vcmask 1043456   ;;  %vm296_vm14 = vcmask 195584   ;;  %vm385_vm15 = vcmask 326656  }
   0xa   :  { %83 = vperm.xlu0 %633, %v33_v13   ;;  %601 = vmatprep.subr.bf16.mxu0 %v703_v38  ;;  %v52_v48 = vand.u32 15, %v47_v47  ;;  %vm433_vm0 = vcmask 261120  }
   0xb   :  { %171 = vrot.lane.b32.xlu1 %v757_v2, %s702_s27 }
   0xc   :  { %590 = vmatmul.mubr.msk.bf16.vlgmr.msra.gmra.mrb[0].mxu0 %vm99_vm2, %v666_v14  ;;  %v823_v52 = vadd.s32 4294967295, %v52_v48  ;;  %v835_v57 = vadd.s32 1, %v52_v48 }
   0xd   :  { %605 = vmatprep.mubr.msk.bf16.mxu0 %vm706_vm4, %v703_v38 }
   0xe   :  { %vm65_vm5 = vcmp.ge.s32.totalorder %v823_v52, 0  ;;  %vm70_vm6 = vcmp.lt.s32.totalorder %v835_v57, 16 }
   0xf   :  { %vm559_vm9 = vmpackc.low %vm710_vm8, %vm65_vm5 }
  0x10   :  { %vm567_vm13 = vmpackc.low %vm70_vm6, %vm710_vm8 }
  0x79   :  { %v636_v15 = vpop.permute.xlu1 %635 }
  0x7a   :  { %v638_v17 = vunpack.i.h.bf16 %v636_v15  ;;  %v637_v18 = vunpack.i.l.bf16 %v636_v15 }
  0x7c   :  { %v167_v23 = vsel %vm164_vm3, %v637_v18, %v747_v0  ;;  %v170_v24 = vsel %vm164_vm3, %v638_v17, %v752_v1 }
  0x7d   :  { %v639_v29 = vpack.i.bf16 %v170_v24, %v167_v23  ;;  %v172_v31 = vpop.permute.xlu1 %171  ;;  %v30_v23 = vld [vmem:[%s940_s1 + $0xc] sm:$0xf] }
  0x7e   :  { %v173_v32 = vsel %vm164_vm3, %v172_v31, %v757_v2 }
  0x85   :  { %v89_v16 = vpop.permute.xlu0 %88 }
  0x89   :  { %v84_v25 = vpop.permute.xlu0 %83 }
  0xdf   :  { %v591_v19 = vpop.f32.mrb[0].mxu0 }
  0xe0   :  { %v156_v20 = vadd.f32 %v591_v19, %v89_v16  ;;  %v785_v21 = vpop.f32.mrb[1].mxu0  ;;  %v37_v16 = vld [vmem:[%s942_s3 + $0x28] sm:$0xff]  ;;  %v36_v19 = vld [vmem:[%s942_s3 + $0x20] sm:$0xff] }
  0xe1   :  { %v592_v22 = vpop.f32.mrb[2].mxu0 }
  0xe2   :  { %v791_v26 = vmax.f32 %v156_v20, 0.0  ;;  %v150_v27 = vpop.f32.mrb[3].mxu0 }
  0xe3   :  { %v151_v28 = vadd.f32 %v150_v27, %v84_v25  ;;  %v60_v25 = vadd.s32 4294967294, %v52_v48  ;;  %v72_v27 = vadd.s32 2, %v52_v48 }
  0xe4   :  { %345 = vrot.lane.b32.xlu0 %v791_v26, %s702_s27 }
  0xe5   :  { %v795_v30 = vmax.f32 %v151_v28, 0.0  ;;  %vm61_vm7 = vcmp.ge.s32.totalorder %v60_v25, 0  ;;  %vm74_vm10 = vcmp.lt.s32.totalorder %v72_v27, 16 }
  0xe6   :  { %vm564_vm11 = vmpackc.low %vm65_vm5, %vm61_vm7 }
  0xe7   :  { %274 = vrot.lane.b32.xlu1 %v795_v30, %s702_s27 }
  0xe8   :  { %640 = vrot.lane.b32.xlu0 %v639_v29, %s702_s27 }
  0xeb   :  { %178 = vrot.lane.b32.xlu1 %v173_v32, %s702_s27 }
 0x156   :  { %v346_v33 = vpop.permute.xlu0 %345 }
 0x157   :  { %v347_v34 = vsel %vm164_vm3, %v346_v33, %v791_v26 }
 0x158   :  { %348 = vrot.lane.b32.xlu0 %v347_v34, %s702_s27 }
 0x159   :  { %v275_v35 = vpop.permute.xlu1 %274 }
 0x15a   :  { %v641_v36 = vpop.permute.xlu0 %640  ;;  %v276_v37 = vsel %vm164_vm3, %v275_v35, %v795_v30 }
 0x15b   :  { %v643_v39 = vunpack.i.h.bf16 %v641_v36  ;;  %v642_v40 = vunpack.i.l.bf16 %v641_v36  ;;  %277 = vrot.lane.b32.xlu1 %v276_v37, %s702_s27 }
 0x15d   :  { %v180_v41 = vsel %vm164_vm3, %v642_v40, %v747_v0  ;;  %v181_v42 = vsel %vm164_vm3, %v643_v39, %v752_v1  ;;  %v179_v43 = vpop.permute.xlu1 %178 }
 0x15e   :  { %v644_v44 = vpack.i.bf16 %v181_v42, %v180_v41  ;;  %v182_v45 = vsel %vm164_vm3, %v179_v43, %v757_v2 }
 0x15f   :  { %192 = vrot.lane.b32.xlu1 %v182_v45, %s704_s7 }
 0x160   :  { %645 = vrot.lane.b32.xlu0 %v644_v44, %s704_s7 }
 0x163   :  { %209 = vrot.lane.b32.xlu1 %v182_v45, %s705_s8 }
 0x164   :  { %650 = vrot.lane.b32.xlu0 %v644_v44, %s705_s8 }
 0x1ca   :  { %v349_v49 = vpop.permute.xlu0 %348 }
 0x1cb   :  { %v350_v50 = vsel %vm164_vm3, %v349_v49, %v791_v26 }
 0x1cc   :  { %354 = vrot.lane.b32.xlu0 %v350_v50, %s707_s9 }
 0x1cd   :  { %v278_v51 = vpop.permute.xlu1 %277 }
 0x1ce   :  { %v279_v53 = vsel %vm164_vm3, %v278_v51, %v795_v30 }
 0x1cf   :  { %v659_v55 = vpack.i.bf16 %v279_v53, %v350_v50 }
 0x1d1   :  { %660 = vrot.lane.b32.xlu0 %v659_v55, %s705_s8  ;;  %655 = vrot.lane.b32.xlu1 %v659_v55, %s704_s7  ;;  %v193_v58 = vpop.permute.xlu1 %192 }
 0x1d2   :  { %v646_v59 = vpop.permute.xlu0 %645  ;;  %v199_v60 = vsel %vm65_vm5, %v193_v58, -inf }
 0x1d3   :  { %v648_v61 = vunpack.i.h.bf16 %v646_v59  ;;  %v647_v62 = vunpack.i.l.bf16 %v646_v59  ;;  %v202_v63 = vmax.f32 %v199_v60, %v757_v2  ;;  %v35_v2 = vld [vmem:[%s942_s3 + $0x18] sm:$0xff] }
 0x1d5   :  { %v198_v3 = vsel %vm65_vm5, %v648_v61, -inf  ;;  %v197_v4 = vsel %vm65_vm5, %v647_v62, -inf  ;;  %383 = vrot.lane.b32.xlu0 %v563_v56, %s708_s2  ;;  %368 = vrot.lane.b32.xlu1 %v350_v50, %s709_s12  ;;  %v210_v5 = vpop.permute.xlu1 %209 }
 0x1d6   :  { %v201_v6 = vmax.f32 %v198_v3, %v752_v1  ;;  %v200_v7 = vmax.f32 %v197_v4, %v747_v0  ;;  %v651_v8 = vpop.permute.xlu0 %650  ;;  %v216_v11 = vsel %vm70_vm6, %v210_v5, -inf }
 0x1d7   :  { %v653_v12 = vunpack.i.h.bf16 %v651_v8  ;;  %v652_v13 = vunpack.i.l.bf16 %v651_v8  ;;  %v219_v14 = vmax.f32 %v202_v63, %v216_v11 }
 0x1d9   :  { %v215_v1 = vsel %vm70_vm6, %v653_v12, -inf  ;;  %v214_v0 = vsel %vm70_vm6, %v652_v13, -inf  ;;  %224 = vperm.xlu0 %633, %v35_v2   ;;  %78 = vperm.xlu1 %664, %v32_v10   ;;  %v221_v15 = vpack.c.bf16 %v219_v14, %v219_v14  ;;  %v38_v14 = vld [vmem:[%s943_s4] sm:$0xff] }
 0x1da   :  { %v217_v17 = vmax.f32 %v200_v7, %v214_v0  ;;  %v218_v18 = vmax.f32 %v201_v6, %v215_v1  ;;  %v41_v1 = vld [vmem:[%s943_s4 + $0x18] sm:$0xff] }
 0x1db   :  { %v231_v22 = vand.u32 %v221_v15, %v768_v9  ;;  %v43_v15 = vld [vmem:[%s943_s4 + $0x28] sm:$0xff] }
 0x1dc   :  { %v220_v20 = vpack.c.bf16 %v218_v18, %v217_v17 }
 0x1dd   :  { %377 = vperm.xlu0 %633, %v37_v16   ;;  %293 = vperm.xlu1 %664, %v36_v19  }
 0x1de   :  { %594 = vmatpush3.bf16.msra.mxu1 %v220_v20  ;;  %v39_v20 = vld [vmem:[%s943_s4 + $0x8] sm:$0xff] }
 0x1df   :  { %595 = vmatprep.subr.bf16.mxu1 %v703_v38 }
 0x1e2   :  { %596 = vmatpush3.bf16.msra.mxu1 %v231_v22  ;;  %v40_v22 = vld [vmem:[%s943_s4 + $0x10] sm:$0xff] }
 0x1e3   :  { %609 = vmatprep.subr.bf16.mxu1 %v703_v38 }
 0x1e5   :  { %598 = vmatmul.mubr.msk.bf16.vlgmr.msra.gmra.mrb[0].mxu1 %vm99_vm2, %v30_v23  ;;  %v42_v23 = vld [vmem:[%s943_s4 + $0x20] sm:$0xff] }
 0x1e6   :  { %615 = vmatprep.mubr.msk.bf16.mxu1 %vm706_vm4, %v703_v38 }
 0x23e   :  { %v355_v24 = vpop.permute.xlu0 %354 }
 0x243   :  { %v661_v28 = vpop.permute.xlu0 %660  ;;  %v656_v9 = vpop.permute.xlu1 %655 }
 0x244   :  { %v663_v29 = vunpack.i.h.bf16 %v661_v28  ;;  %v658_v31 = vunpack.i.h.bf16 %v656_v9  ;;  %v657_v32 = vunpack.i.l.bf16 %v656_v9  ;;  %v662_v34 = vunpack.i.l.bf16 %v661_v28 }
 0x246   :  { %v288_v33 = vsel %vm70_vm6, %v663_v29, 0.0  ;;  %v560_v35 = vpack.c.bf16 %v795_v30, %v658_v31  ;;  %v565_v36 = vpack.c.bf16 %v657_v32, %v355_v24  ;;  %v568_v41 = vpack.c.bf16 %v662_v34, %v791_v26 }
 0x247   :  { %v290_v37 = vpack.c.bf16 %v288_v33, %v288_v33  ;;  %v369_v39 = vpop.permute.xlu1 %368  ;;  %v384_v44 = vpop.permute.xlu0 %383 }
 0x248   :  { %v371_v40 = vsel %vm74_vm10, %v369_v39, 0.0  ;;  %602 = vmatpush3.bf16.msk.msra.mxu0 %vm559_vm9, %v560_v35  ;;  %610 = vmatpush3.bf16.msk.msra.mxu1 %vm564_vm11, %v565_v36  ;;  %v44_v35 = vld [vmem:[%s943_s4 + $0x30] sm:$0xff]  ;;  %v45_v39 = vld [vmem:[%s943_s4 + $0x38] sm:$0xff]  ;;  %s711_s4 = smov [#allocation2]  }
 0x249   :  { %603 = vmatprep.subr.bf16.mxu0 %v703_v38  ;;  %611 = vmatprep.subr.bf16.mxu1 %v703_v38  ;;  %v374_v42 = vpack.c.bf16 %v371_v40, %v371_v40  ;;  %v302_v43 = vsel %vm300_vm12, %v290_v37, 0  ;;  %s543_s11 = sshll.u32 %s711_s4, 4  ;;  %s544_s11 = int_to_ptr.vmem [resolvable:$true] %s543_s11 }
 0x24a   :  { %s676_s2 = scalar_lea.vmem %s544_s11, 512  ;;  %p681_p1 = scmp.lt.s32.totalorder %s544_s11, %s544_s11 }
 0x24b   :  { %v390_v30 = vsel %vm300_vm12, %v374_v42, 0  ;;  %p677_p0 = scmp.ne.s32.totalorder %s544_s11, %s676_s2  ;;  %p682_p2 = scmp.lt.s32.totalorder %s676_s2, %s676_s2 }
 0x24c   :  { %604 = vmatpush3.bf16.msra.mxu0 %v302_v43  ;;  %612 = vmatpush3.bf16.msk.msra.mxu1 %vm567_vm13, %v568_v41 }
 0x24d   :  { %613 = vmatprep.subr.bf16.mxu1 %v703_v38  ;;  %p683_p3 = por %p682_p2, %p681_p1 }
 0x24f   :  { %606 = vmatmul.mubr.msk.bf16.vlgmr.msra.gmra.mrb[4].mxu0 %vm296_vm14, %v830_v54  ;;  %p684_p4 = pnand %p683_p3, %p677_p0 }
 0x250   :  { %614 = vmatpush3.bf16.msra.mxu1 %v390_v30 }
 0x253   :  { %616 = vmatmul.mubr.msk.bf16.vlgmr.msra.gmra.mrb[4].mxu1 %vm385_vm15, %v384_v44 }
 0x258   :  { %v79_v45 = vpop.permute.xlu1 %78  ;;  %v225_v48 = vpop.permute.xlu0 %224 }
 0x259   :  { %v148_v46 = vadd.f32 %v785_v21, %v79_v45 }
 0x25b   :  { %v161_v47 = vmax.f32 %v148_v46, 0.0 }
 0x25c   :  { %v294_v55 = vpop.permute.xlu1 %293  ;;  %v378_v63 = vpop.permute.xlu0 %377 }
 0x25d   :  { %v434_v26 = vsel %vm433_vm0, %v161_v47, 0.0 }
 0x25e   :  { %435 = vadd.xlane.f32.xlu1 %v434_v26 }
 0x2b8   :  { %v267_v49 = vpop.f32.mrb[0].mxu1 }
 0x2b9   :  { %v268_v50 = vadd.f32 %v267_v49, %v225_v48  ;;  %v599_v51 = vpop.f32.mrb[1].mxu1 }
 0x2ba   :  { %v270_v38 = vpop.f32.mrb[2].mxu1 }
 0x2bb   :  { %v273_v52 = vmax.f32 %v268_v50, 0.0  ;;  %v600_v53 = vpop.f32.mrb[3].mxu1 }
 0x2bd   :  { %v443_v54 = vsel %vm433_vm0, %v273_v52, 0.0 }
 0x2be   :  { %444 = vadd.xlane.f32.xlu1 %v443_v54 }
 0x2eb   :  { %v436_v56 = vpop.xlane.xlu1 %435 }
 0x2ec   :  { %v446_v58 = vmul.f32 0.03125, %v436_v56 }
 0x2ee   :  { %v450_v4 = vsub.f32 %v161_v47, %v446_v58 }
 0x2f0   :  { %v454_v12 = vmul.f32 %v450_v4, %v450_v4 }
 0x2f2   :  { %v458_v13 = vsel %vm433_vm0, %v454_v12, 0.0 }
 0x322   :  { %v338_v57 = vpop.f32.mrb[4].mxu0 }
 0x323   :  { %v339_v21 = vadd.f32 %v338_v57, %v294_v55  ;;  %v607_v59 = vpop.f32.mrb[5].mxu0 }
 0x324   :  { %v341_v60 = vpop.f32.mrb[6].mxu0 }
 0x325   :  { %v344_v61 = vmax.f32 %v339_v21, 0.0  ;;  %v608_v62 = vpop.f32.mrb[7].mxu0 }
 0x326   :  { %v426_v3 = vpop.f32.mrb[4].mxu1 }
 0x327   :  { %v427_v5 = vadd.f32 %v426_v3, %v378_v63  ;;  %v617_v6 = vpop.f32.mrb[5].mxu1  ;;  %v437_v7 = vsel %vm433_vm0, %v344_v61, 0.0 }
 0x328   :  { %438 = vadd.xlane.f32.xlu0 %v437_v7  ;;  %v429_v8 = vpop.f32.mrb[6].mxu1 }
 0x329   :  { %v432_v2 = vmax.f32 %v427_v5, 0.0  ;;  %v618_v10 = vpop.f32.mrb[7].mxu1 }
 0x32b   :  { %v440_v11 = vsel %vm433_vm0, %v432_v2, 0.0 }
 0x32c   :  { %441 = vadd.xlane.f32.xlu0 %v440_v11 }
 0x330   :  { %459 = vadd.xlane.f32.xlu0 %v458_v13 }
 0x346   :  { %488 = vperm.xlu0 %633, %v38_v14  }
 0x34a   :  { %503 = vperm.xlu0 %633, %v41_v1  }
 0x34b   :  { %v445_v0 = vpop.xlane.xlu1 %444 }
 0x34c   :  { %v449_v16 = vmul.f32 0.03125, %v445_v0 }
 0x34e   :  { %v453_v17 = vsub.f32 %v273_v52, %v449_v16  ;;  %517 = vperm.xlu0 %633, %v43_v15  }
 0x350   :  { %v457_v18 = vmul.f32 %v453_v17, %v453_v17 }
 0x352   :  { %v467_v19 = vsel %vm433_vm0, %v457_v18, 0.0 }
 0x353   :  { %468 = vadd.xlane.f32.xlu1 %v467_v19 }
 0x364   :  { %493 = vperm.xlu1 %664, %v39_v20  }
 0x368   :  { %498 = vperm.xlu1 %664, %v40_v22  }
 0x36c   :  { %512 = vperm.xlu1 %664, %v42_v23  }
 0x3b5   :  { %v439_v24 = vpop.xlane.xlu0 %438 }
 0x3b6   :  { %v447_v25 = vmul.f32 0.03125, %v439_v24 }
 0x3b8   :  { %v451_v27 = vsub.f32 %v344_v61, %v447_v25 }
 0x3b9   :  { %v442_v28 = vpop.xlane.xlu0 %441 }
 0x3ba   :  { %v448_v9 = vmul.f32 0.03125, %v442_v28  ;;  %v455_v29 = vmul.f32 %v451_v27, %v451_v27 }
 0x3bc   :  { %v452_v31 = vsub.f32 %v432_v2, %v448_v9  ;;  %v461_v32 = vsel %vm433_vm0, %v455_v29, 0.0 }
 0x3bd   :  { %462 = vadd.xlane.f32.xlu1 %v461_v32  ;;  %v460_v36 = vpop.xlane.xlu0 %459 }
 0x3be   :  { %v456_v33 = vmul.f32 %v452_v31, %v452_v31  ;;  %v470_v37 = vmul.f32 0.03125, %v460_v36 }
 0x3c0   :  { %v464_v34 = vsel %vm433_vm0, %v456_v33, 0.0  ;;  %v474_v40 = vadd.f32 1e-05, %v470_v37 }
 0x3c1   :  { %465 = vadd.xlane.f32.xlu0 %v464_v34 }
 0x3c2   :  { %668 = vrsqrt.f32 %v474_v40 }
 0x3c5   :  { %v489_v45 = vpop.permute.xlu0 %488 }
 0x3c9   :  { %v504_v50 = vpop.permute.xlu0 %503 }
 0x3cc   :  { %v669_v42 = vpop.eup %668 }
 0x3cd   :  { %v482_v30 = vmul.f32 %v669_v42, %v450_v4  ;;  %v518_v51 = vpop.permute.xlu0 %517 }
 0x3ce   :  { %522 = vperm.xlu1 %664, %v44_v35  }
 0x3cf   :  { %v506_v46 = vmul.f32 %v489_v45, %v482_v30 }
 0x3d7   :  { %527 = vperm.xlu0 %633, %v45_v39  }
 0x3e0   :  { %v469_v41 = vpop.xlane.xlu1 %468 }
 0x3e1   :  { %v473_v48 = vmul.f32 0.03125, %v469_v41 }
 0x3e3   :  { %v477_v49 = vadd.f32 1e-05, %v473_v48 }
 0x3e4   :  { %v494_v43 = vpop.permute.xlu1 %493 }
 0x3e5   :  { %670 = vrsqrt.f32 %v477_v49 }
 0x3e8   :  { %v499_v44 = vpop.permute.xlu1 %498 }
 0x3ec   :  { %v513_v47 = vpop.permute.xlu1 %512 }
 0x3ed   :  { %v530_v26 = vadd.f32 %v513_v47, %v506_v46 }
 0x3ef   :  { %534 = vst.msk [vmem:[#allocation2] sm:$0xff] %vm433_vm0, %v530_v26  ;;  %v671_v54 = vpop.eup %670 }
 0x3f0   :  { %v485_v58 = vmul.f32 %v671_v54, %v453_v17 }
 0x3f2   :  { %v509_v21 = vmul.f32 %v504_v50, %v485_v58 }
 0x44a   :  { %v463_v38 = vpop.xlane.xlu1 %462 }
 0x44b   :  { %v471_v52 = vmul.f32 0.03125, %v463_v38 }
 0x44d   :  { %v475_v53 = vadd.f32 1e-05, %v471_v52 }
 0x44e   :  { %v466_v55 = vpop.xlane.xlu0 %465  ;;  %v523_v7 = vpop.permute.xlu1 %522 }
 0x44f   :  { %672 = vrsqrt.f32 %v475_v53  ;;  %v472_v56 = vmul.f32 0.03125, %v466_v55 }
 0x451   :  { %v476_v57 = vadd.f32 1e-05, %v472_v56 }
 0x453   :  { %674 = vrsqrt.f32 %v476_v57 }
 0x456   :  { %v528_v59 = vpop.permute.xlu0 %527 }
 0x457   :  { %v533_v60 = vadd.f32 %v528_v59, %v509_v21 }
 0x459   :  { %v673_v61 = vpop.eup %672  ;;  %537 = vst.msk [vmem:[#allocation2 + $0x18] sm:$0xff] %vm433_vm0, %v533_v60 }
 0x45a   :  { %v483_v62 = vmul.f32 %v673_v61, %v451_v27 }
 0x45c   :  { %v507_v63 = vmul.f32 %v494_v43, %v483_v62 }
 0x45d   :  { %v675_v3 = vpop.eup %674 }
 0x45e   :  { %v531_v4 = vadd.f32 %v518_v51, %v507_v63  ;;  %v484_v5 = vmul.f32 %v675_v3, %v452_v31 }
 0x460   :  { %535 = vst.msk [vmem:[#allocation2 + $0x8] sm:$0xff] %vm433_vm0, %v531_v4  ;;  %v508_v6 = vmul.f32 %v499_v44, %v484_v5 }
 0x462   :  { %v532_v8 = vadd.f32 %v523_v7, %v508_v6 }
 0x464   :  { %536 = vst.msk [vmem:[#allocation2 + $0x10] sm:$0xff] %vm433_vm0, %v532_v8 }
 0x465   :  { %687 = shalt.err (!%p684_p4)
}
 0x466   :  { %s688_s14 = scalar_lea.hbm %s944_s5, 512 }
 0x467   :  { %p689_p5 = scmp.ne.s32.totalorder %s944_s5, %s688_s14  ;;  %p692_p6 = scmp.lt.u32.totalorder %s688_s14, %s944_s5 }
 0x469   :  { %p694_p7 = pnand %p692_p6, %p689_p5 }
 0x46b   :  { %697 = shalt.err (!%p694_p7)
}
 0x46c   :  { %s712_s19 = smov 128   ;;  %s713_s20 = smov 8  }
 0x46d   :  { %549 = dma.vmem_to_hbm [thread:$0]  %s544_s11, 512, %s944_s5, [#allocation3], %s712_s19, %s712_s19, %s713_s20  }
 0x46e   :  { %698 = dma.done.wait [#allocation3], 512  }
 0x46f   :  { %699 = vsyncadd [#allocation3], 4294966784 }
 0x470   :  { %553 = vsyncpa [#allocation3], 1 }

</bundles_post_ra>
